<compile_context>
chip_gen: v7x
topology: tpu7x:2x2x1
jax: 0.10.0
libtpu: 0.0.40
codegen_flags: <defaults>
</compile_context>

<pallas_src>
import jax
import jax.numpy as jnp
from jax.experimental import pallas as pl
from jax.experimental.pallas import tpu as pltpu

NUM_FEATURES = 128
SIM_COEFF = 25.0
STD_COEFF = 25.0
COV_COEFF = 1.0


def _vicreg_kernel(x_ref, y_ref, o_ref):
    x = x_ref[...].astype(jnp.float32)
    y = y_ref[...].astype(jnp.float32)
    B, D = x.shape

    # Compile-time scalar coefficients (factor 2 for identical x/y statistics
    # and the 1/2's of std_loss are already folded in).
    s_repr = SIM_COEFF / (B * D)                      # sim * mean((x-y)^2)
    s_std = STD_COEFF / D                             # std * mean(relu(1-std)) (x==y sides)
    s_cov = 2.0 * COV_COEFF / (D * (B - 1) ** 2)      # 2 * cov / (D*(B-1)^2)

    # repr_loss term — the only place the original `y` is used.
    diff = x - y

    # Gathered x == x (world_size 1); module sets gathered y := gathered x.
    xg = x - jnp.mean(x, axis=0, keepdims=True)

    # Per-feature sum of squares: feeds both the (unbiased) variance and the
    # covariance diagonal.  Sublane reduce, stays lane-resident [1, D].
    col_ss = jnp.sum(xg * xg, axis=0, keepdims=True)
    std = jnp.sqrt(col_ss * (1.0 / (B - 1)) + 0.001)

    # B x B Gram matrix: contract the 128-lane feature axis (8x8 result,
    # K=128) instead of forming the 128x128 covariance (K=8).
    gram = jax.lax.dot_general(
        xg, xg,
        dimension_numbers=(((1,), (1,)), ((), ())),
        preferred_element_type=jnp.float32,
    )
    # Exact identity: sum(gram^2) = trace(gram @ gram) = sum((gram @ xg) * xg),
    # expressed as a [B, D] elementwise product so it folds into the same lane
    # accumulator as the repr term — one cross-lane reduce for the whole loss.
    h = jnp.dot(gram, xg, preferred_element_type=jnp.float32)

    rows = diff * diff * s_repr + (h * xg) * s_cov               # [B, D]
    lane_acc = (jnp.sum(rows, axis=0, keepdims=True)             # [1, D]
                + jnp.maximum(1.0 - std, 0.0) * s_std
                - (col_ss * col_ss) * s_cov)                     # diag correction

    o_ref[0, 0] = jnp.sum(lane_acc)


def vicreg_loss(x, y):
    B, D = x.shape
    assert B > 1, "VICReg variance/covariance require batch > 1"
    assert x.shape == y.shape
    # NOTE: x and y are two separate (descriptor-latency-bound) 4 KiB DMAs;
    # producers that lay them out adjacently could pass a single [2, B, D]
    # slab instead.  Stacking here in the wrapper would just add an XLA copy.
    out = pl.pallas_call(
        _vicreg_kernel,
        out_shape=jax.ShapeDtypeStruct((1, 1), jnp.float32),
        in_specs=[
            pl.BlockSpec(memory_space=pltpu.MemorySpace.VMEM),
            pl.BlockSpec(memory_space=pltpu.MemorySpace.VMEM),
        ],
        out_specs=pl.BlockSpec(memory_space=pltpu.MemorySpace.SMEM),
    )(x, y)
    return out[0, 0]


def vicreg_loss_ref(x, y):
    """Pure-JAX reference mirroring the PyTorch forward (world_size == 1)."""
    B, D = x.shape
    repr_loss = jnp.mean((x - y) ** 2)
    xg = x            # cat(all_gather(x)) at world_size == 1
    yg = xg           # module: y = cat(all_gather(x))  (gathers x, not y)
    xg = xg - xg.mean(axis=0)
    yg = yg - yg.mean(axis=0)
    std_x = jnp.sqrt(jnp.var(xg, axis=0, ddof=1) + 0.001)
    std_y = jnp.sqrt(jnp.var(yg, axis=0, ddof=1) + 0.001)
    std_loss = jnp.mean(jax.nn.relu(1 - std_x)) / 2 + jnp.mean(jax.nn.relu(1 - std_y)) / 2
    cov_x = xg.T @ xg / (B - 1)
    cov_y = yg.T @ yg / (B - 1)
    off = ~jnp.eye(D, dtype=bool)
    cov_loss = (jnp.sum(jnp.where(off, cov_x, 0.0) ** 2) / NUM_FEATURES
                + jnp.sum(jnp.where(off, cov_y, 0.0) ** 2) / NUM_FEATURES)
    return SIM_COEFF * repr_loss + STD_COEFF * std_loss + COV_COEFF * cov_loss


if __name__ == "__main__":
    B, D = 8, NUM_FEATURES
    key = jax.random.PRNGKey(0)
    kx, ky = jax.random.split(key)
    x = jax.random.normal(kx, (B, D), dtype=jnp.float32)
    y = jax.random.normal(ky, (B, D), dtype=jnp.float32)

    loss = jax.block_until_ready(vicreg_loss(x, y))
    ref = jax.block_until_ready(vicreg_loss_ref(x, y))

    assert jnp.isfinite(loss), "non-finite loss"
    assert jnp.allclose(loss, ref, rtol=1e-3, atol=1e-3), (loss, ref)
    print("KERNEL_OK")
</pallas_src>

<mosaic_0001>
module attributes {stable_mosaic.version = 11 : i64} {
  func.func @_vicreg_kernel(%arg0: memref<8x128xf32, #tpu.memory_space<vmem>>, %arg1: memref<8x128xf32, #tpu.memory_space<vmem>>, %arg2: memref<1x1xf32, #tpu.memory_space<smem>>) attributes {dimension_semantics = [], scalar_prefetch = 0 : i64, scratch_operands = 0 : i64, tpu.core_type = #tpu.core_type<tc>} {
    %c0 = arith.constant 0 : index
    %c0_0 = arith.constant 0 : index
    %0 = vector.load %arg0[%c0, %c0_0] : memref<8x128xf32, #tpu.memory_space<vmem>>, vector<8x128xf32>
    %c0_1 = arith.constant 0 : index
    %c0_2 = arith.constant 0 : index
    %1 = vector.load %arg1[%c0_1, %c0_2] : memref<8x128xf32, #tpu.memory_space<vmem>>, vector<8x128xf32>
    %2 = arith.subf %0, %1 : vector<8x128xf32>
    %cst = arith.constant dense<0.000000e+00> : vector<128xf32>
    %3 = vector.multi_reduction <add>, %0, %cst [0] : vector<8x128xf32> to vector<128xf32>
    %4 = vector.shape_cast %3 : vector<128xf32> to vector<1x128xf32>
    %cst_3 = arith.constant 8.000000e+00 : f32
    %5 = vector.broadcast %cst_3 : f32 to vector<1x128xf32>
    %6 = arith.divf %4, %5 : vector<1x128xf32>
    %7 = vector.broadcast %6 : vector<1x128xf32> to vector<8x128xf32>
    %8 = arith.subf %0, %7 : vector<8x128xf32>
    %9 = arith.mulf %8, %8 : vector<8x128xf32>
    %cst_4 = arith.constant dense<0.000000e+00> : vector<128xf32>
    %10 = vector.multi_reduction <add>, %9, %cst_4 [0] : vector<8x128xf32> to vector<128xf32>
    %11 = vector.shape_cast %10 : vector<128xf32> to vector<1x128xf32>
    %cst_5 = arith.constant 0.142857149 : f32
    %12 = vector.broadcast %cst_5 : f32 to vector<1x128xf32>
    %13 = arith.mulf %11, %12 : vector<1x128xf32>
    %cst_6 = arith.constant 1.000000e-03 : f32
    %14 = vector.broadcast %cst_6 : f32 to vector<1x128xf32>
    %15 = arith.addf %13, %14 : vector<1x128xf32>
    %16 = math.sqrt %15 : vector<1x128xf32>
    %cst_7 = arith.constant dense<0.000000e+00> : vector<8x8xf32>
    %17 = tpu.matmul %8, %8, %cst_7 {dimension_numbers = #tpu.dot_dimension_numbers<[1], [1], [0], [0], [0, 0, 1, 0], [], []>} : vector<8x128xf32>, vector<8x128xf32>, vector<8x8xf32> -> vector<8x8xf32>
    %cst_8 = arith.constant dense<0.000000e+00> : vector<8x128xf32>
    %18 = tpu.matmul %17, %8, %cst_8 {dimension_numbers = #tpu.dot_dimension_numbers<[1], [0], [0], [1], [0, 0, 1, 1], [], []>} : vector<8x8xf32>, vector<8x128xf32>, vector<8x128xf32> -> vector<8x128xf32>
    %19 = arith.mulf %2, %2 : vector<8x128xf32>
    %cst_9 = arith.constant 0.0244140625 : f32
    %20 = vector.broadcast %cst_9 : f32 to vector<8x128xf32>
    %21 = arith.mulf %19, %20 : vector<8x128xf32>
    %22 = arith.mulf %18, %8 : vector<8x128xf32>
    %cst_10 = arith.constant 3.18877544E-4 : f32
    %23 = vector.broadcast %cst_10 : f32 to vector<8x128xf32>
    %24 = arith.mulf %22, %23 : vector<8x128xf32>
    %25 = arith.addf %21, %24 : vector<8x128xf32>
    %cst_11 = arith.constant dense<0.000000e+00> : vector<128xf32>
    %26 = vector.multi_reduction <add>, %25, %cst_11 [0] : vector<8x128xf32> to vector<128xf32>
    %27 = vector.shape_cast %26 : vector<128xf32> to vector<1x128xf32>
    %cst_12 = arith.constant 1.000000e+00 : f32
    %28 = vector.broadcast %cst_12 : f32 to vector<1x128xf32>
    %29 = arith.subf %28, %16 : vector<1x128xf32>
    %cst_13 = arith.constant 0.000000e+00 : f32
    %30 = vector.broadcast %cst_13 : f32 to vector<1x128xf32>
    %31 = arith.maximumf %29, %30 : vector<1x128xf32>
    %cst_14 = arith.constant 0.1953125 : f32
    %32 = vector.broadcast %cst_14 : f32 to vector<1x128xf32>
    %33 = arith.mulf %31, %32 : vector<1x128xf32>
    %34 = arith.addf %27, %33 : vector<1x128xf32>
    %35 = arith.mulf %11, %11 : vector<1x128xf32>
    %cst_15 = arith.constant 3.18877544E-4 : f32
    %36 = vector.broadcast %cst_15 : f32 to vector<1x128xf32>
    %37 = arith.mulf %35, %36 : vector<1x128xf32>
    %38 = arith.subf %34, %37 : vector<1x128xf32>
    %39 = vector.shape_cast %38 : vector<1x128xf32> to vector<1x1x128xf32>
    %cst_16 = arith.constant dense<0.000000e+00> : vector<1xf32>
    %40 = vector.multi_reduction <add>, %39, %cst_16 [1, 2] : vector<1x1x128xf32> to vector<1xf32>
    %41 = vector.shape_cast %40 : vector<1xf32> to vector<1x1x1xf32>
    %42 = vector.extract %41[0, 0, 0] : f32 from vector<1x1x1xf32>
    %c0_17 = arith.constant 0 : index
    %c0_18 = arith.constant 0 : index
    %43 = memref.load %arg2[%c0_17, %c0_18] : memref<1x1xf32, #tpu.memory_space<smem>>
    memref.store %42, %arg2[%c0_17, %c0_18] : memref<1x1xf32, #tpu.memory_space<smem>>
    return
  }
}

</mosaic_0001>

<bundles_post_ra>
// kernel: tpu_custom_call.1
= control target key start
LH: loop header
LB: loop body
LE: loop exit
PB: predicated region body
PF: predicated region fallthrough
CT: control target
= control target key end

     0   :  { %7 = vsyncpa [#allocation3], 0  ;;  %s394_s0 = inlined_call_operand.hbm [shape: f32[8,128], index: 0, kind: input, shape index: {}]   ;;  %s395_s1 = inlined_call_operand.hbm [shape: f32[8,128], index: 1, kind: input, shape index: {}]   ;;  %s396_s2 = inlined_call_operand.hbm [shape: f32[1,1], index: 2, kind: output, shape index: {}]  }
   0x1   :  { %8 = vsyncpa [#allocation6], 0 }
   0x2   :  { %9 = vsyncpa [#allocation4], 0  ;;  %s338_s9 = smov [#allocation2]   ;;  %s339_s11 = smov [#allocation5]  }
   0x3   :  { %s16_s10 = sshll.u32 %s338_s9, 4  ;;  %s26_s12 = sshll.u32 %s339_s11, 4  ;;  %s17_s10 = int_to_ptr.vmem [resolvable:$true] %s16_s10  ;;  %s27_s12 = int_to_ptr.vmem [resolvable:$true] %s26_s12 }
   0x4   :  { %s278_s15 = scalar_lea.hbm %s394_s0, 128 }
   0x5   :  { %p279_p0 = scmp.ne.s32.totalorder %s394_s0, %s278_s15  ;;  %p282_p1 = scmp.lt.u32.totalorder %s278_s15, %s394_s0 }
   0x7   :  { %p284_p2 = pnand %p282_p1, %p279_p0 }
   0x9   :  { %287 = shalt.err (!%p284_p2)
}
   0xa   :  { %s288_s20 = scalar_lea.vmem %s17_s10, 128  ;;  %p293_p4 = scmp.lt.s32.totalorder %s17_s10, %s17_s10 }
   0xb   :  { %p289_p3 = scmp.ne.s32.totalorder %s17_s10, %s288_s20  ;;  %p294_p5 = scmp.lt.s32.totalorder %s288_s20, %s288_s20 }
   0xd   :  { %p295_p6 = por %p294_p5, %p293_p4 }
   0xf   :  { %p296_p7 = pnand %p295_p6, %p289_p3 }
  0x11   :  { %299 = shalt.err (!%p296_p7)
}
  0x12   :  { %19 = dma.hbm_to_vmem [thread:$0]  %s394_s0, 128, %s17_s10, [#allocation3]  }
  0x13   :  { %s300_s25 = scalar_lea.hbm %s395_s1, 128 }
  0x14   :  { %p301_p8 = scmp.ne.s32.totalorder %s395_s1, %s300_s25  ;;  %p304_p9 = scmp.lt.u32.totalorder %s300_s25, %s395_s1 }
  0x16   :  { %p306_p10 = pnand %p304_p9, %p301_p8 }
  0x18   :  { %309 = shalt.err (!%p306_p10)
}
  0x19   :  { %s310_s30 = scalar_lea.vmem %s27_s12, 128  ;;  %p315_p12 = scmp.lt.s32.totalorder %s27_s12, %s27_s12 }
  0x1a   :  { %p311_p11 = scmp.ne.s32.totalorder %s27_s12, %s310_s30  ;;  %p316_p13 = scmp.lt.s32.totalorder %s310_s30, %s310_s30 }
  0x1c   :  { %p317_p0 = por %p316_p13, %p315_p12 }
  0x1e   :  { %p318_p1 = pnand %p317_p0, %p311_p11 }
  0x20   :  { %321 = shalt.err (!%p318_p1)
}
  0x21   :  { %29 = dma.hbm_to_vmem [thread:$0]  %s395_s1, 128, %s27_s12, [#allocation6]  }
  0x22   :  { %332 = dma.done.wait [#allocation3], 128  }
  0x23   :  { %333 = vsyncadd [#allocation3], 4294967168 }
  0x24   :  { %334 = dma.done.wait [#allocation6], 128  }
  0x25   :  { %335 = vsyncadd [#allocation6], 4294967168  ;;  %v340_v0 = vmov 0.0   ;;  %vm341_vm0 = vmmov 0   ;;  %v36_v1 = vld [vmem:[#allocation2] sm:$0xff]  ;;  %vm134_vm1 = vcmask 64512  }
  0x26   :  { %259 = vmatprep.subr.mxu0 %v340_v0  ;;  %261 = vmatprep.mubr.msk.f32.mxu0 %vm341_vm0, %v340_v0  ;;  %v39_v2 = vrot.slane %v36_v1, 4  ;;  %v37_v21 = vld [vmem:[#allocation5] sm:$0xff]  ;;  %vm226_vm4 = vcmask 1040384   ;;  %s322_s6 = scalar_lea.hbm %s396_s2, 16 }
  0x27   :  { %264 = vmatprep.subr.mxu1 %v340_v0  ;;  %266 = vmatprep.mubr.msk.f32.mxu1 %vm341_vm0, %v340_v0  ;;  %v38_v22 = vsub.f32 %v36_v1, %v37_v21  ;;  %p323_p2 = scmp.ne.s32.totalorder %s396_s2, %s322_s6  ;;  %p326_p3 = scmp.lt.u32.totalorder %s322_s6, %s396_s2 }
  0x28   :  { %v40_v3 = vadd.f32 %v39_v2, %v36_v1 }
  0x29   :  { %v208_v24 = vmul.f32 %v38_v22, %v38_v22  ;;  %p328_p4 = pnand %p326_p3, %p323_p2 }
  0x2a   :  { %v41_v4 = vrot.slane %v40_v3, 2 }
  0x2b   :  { %v209_v28 = vmul.f32 0.024414063, %v208_v24 }
  0x2c   :  { %v42_v5 = vadd.f32 %v41_v4, %v40_v3 }
  0x2e   :  { %v43_v6 = vrot.slane %v42_v5, 1 }
  0x30   :  { %v44_v7 = vadd.f32 %v43_v6, %v42_v5 }
  0x32   :  { %v46_v8 = vmul.f32 0.125, %v44_v7 }
  0x34   :  { %v47_v9 = vsub.f32 %v36_v1, %v46_v8 }
  0x36   :  { %260 = vmatpush3.xpose.msra.mxu0 %v47_v9  ;;  %265 = vmatpush3.msra.mxu1 %v47_v9  ;;  %v48_v12 = vmul.f32 %v47_v9, %v47_v9 }
  0x38   :  { %v49_v13 = vrot.slane %v48_v12, 4 }
  0x39   :  { %262 = vmatmul.mubr.f32.vlgmr.msra.gmra.mrb[0].mxu0 %v47_v9 }
  0x3a   :  { %v50_v14 = vadd.f32 %v49_v13, %v48_v12 }
  0x3c   :  { %v51_v15 = vrot.slane %v50_v14, 2 }
  0x3e   :  { %v52_v16 = vadd.f32 %v51_v15, %v50_v14 }
  0x40   :  { %v53_v17 = vrot.slane %v52_v16, 1 }
  0x42   :  { %v54_v18 = vadd.f32 %v53_v17, %v52_v16 }
  0x44   :  { %v55_v19 = vmul.f32 0.14285715, %v54_v18  ;;  %v223_v41 = vmul.f32 %v54_v18, %v54_v18 }
  0x46   :  { %v56_v20 = vadd.f32 0.001, %v55_v19  ;;  %v224_v45 = vmul.f32 0.00031887754, %v223_v41 }
  0x48   :  { %276 = vrsqrt.f32 %v56_v20  ;;  %vm59_vm2 = vcmp.eq.f32.partialorder %v56_v20, inf  ;;  %v62_v27 = vand.u32 2147483648, %v56_v20  ;;  %vm61_vm3 = vcmp.eq.f32.partialorder %v56_v20, 0.0 }
  0x52   :  { %v277_v23 = vpop.eup %276 }
  0x53   :  { %v58_v25 = vmul.f32 %v277_v23, %v56_v20 }
  0x55   :  { %v60_v31 = vsel %vm59_vm2, %v56_v20, %v58_v25 }
  0x56   :  { %v63_v33 = vsel %vm61_vm3, %v62_v27, %v60_v31 }
  0x57   :  { %v219_v36 = vsub.f32 1.0, %v63_v33 }
  0x59   :  { %v220_v39 = vmax.f32 %v219_v36, 0.0 }
  0x5b   :  { %v221_v43 = vmul.f32 0.1953125, %v220_v39 }
 0x10c   :  { %v130_v10 = vpop.f32.mrb[0].mxu0 }
 0x10d   :  { %v263_v11 = vpop.f32.mrb[1].mxu0  ;;  %267 = vmatmul.mubr.msk.f32.vlgmr.msra.gmra.mrb[0].mxu1 %vm134_vm1, %v130_v10 }
 0x1e0   :  { %v204_v26 = vpop.f32.mrb[0].mxu1 }
 0x1e1   :  { %v210_v29 = vmul.f32 %v204_v26, %v47_v9  ;;  %v268_v30 = vpop.f32.mrb[1].mxu1 }
 0x1e3   :  { %v211_v32 = vmul.f32 0.00031887754, %v210_v29 }
 0x1e5   :  { %v212_v34 = vadd.f32 %v211_v32, %v209_v28 }
 0x1e7   :  { %v213_v35 = vrot.slane %v212_v34, 4 }
 0x1e9   :  { %v214_v37 = vadd.f32 %v213_v35, %v212_v34 }
 0x1eb   :  { %v215_v38 = vrot.slane %v214_v37, 2 }
 0x1ed   :  { %v216_v40 = vadd.f32 %v215_v38, %v214_v37 }
 0x1ef   :  { %v217_v42 = vrot.slane %v216_v40, 1 }
 0x1f1   :  { %v218_v44 = vadd.f32 %v217_v42, %v216_v40 }
 0x1f3   :  { %v222_v46 = vadd.f32 %v221_v43, %v218_v44 }
 0x1f5   :  { %v225_v47 = vsub.f32 %v222_v46, %v224_v45 }
 0x1f7   :  { %v227_v48 = vsel %vm226_vm4, %v225_v47, 0.0 }
 0x1f8   :  { %228 = vadd.xlane.f32.xlu0 %v227_v48 }
 0x285   :  { %v229_v49 = vpop.xlane.xlu0 %228 }
 0x286   :  { %v230_v50 = vrot.slane %v229_v49, 4 }
 0x288   :  { %v231_v51 = vadd.f32 %v230_v50, %v229_v49 }
 0x28a   :  { %v232_v52 = vrot.slane %v231_v51, 2 }
 0x28c   :  { %v233_v53 = vadd.f32 %v232_v52, %v231_v51 }
 0x28e   :  { %v234_v54 = vrot.slane %v233_v53, 1 }
 0x290   :  { %v235_v55 = vadd.f32 %v234_v54, %v233_v53 }
 0x292   :  { %269 = vpush %v235_v55 }
 0x2c3   :  { %s270_s1 = spop %269 }
 0x2c4   :  { %238 = sst [smem:[#allocation7]] %s270_s1 }
 0x2c5   :  { %331 = shalt.err (!%p328_p4)
}
 0x2c6   :  { %s342_s11 = smov [#allocation7]  }
 0x2c7   :  { %246 = dma.smem_to_hbm %s342_s11, 16, %s396_s2, [#allocation4]  }
 0x2c8   :  { %336 = dma.done.wait [#allocation4], 16  }
 0x2c9   :  { %337 = vsyncadd [#allocation4], 4294967280 }
 0x2ca   :  { %250 = sfence }
 0x2cb   :  { %251 = vsyncpa [#allocation3], 1 }
 0x2cc   :  { %252 = vsyncpa [#allocation6], 1 }
 0x2cd   :  { %253 = vsyncpa [#allocation4], 1 }

</bundles_post_ra>
